<compile_context>
chip_gen: v7x
topology: tpu7x:2x2x1
jax: 0.10.0
libtpu: 0.0.40
codegen_flags: <defaults>
</compile_context>

<pallas_src>
import functools
import math

import jax
import jax.numpy as jnp
import numpy as np
from jax import lax
from jax.experimental import pallas as pl
from jax.experimental.pallas import tpu as pltpu

BN_EPS = 1e-5

# "auto" -> bf16 matmul operands (f32 accumulation) on v6e/v7x, f32 elsewhere.
# Set to None to force f32 everywhere, or jnp.bfloat16 to force bf16.
DEFAULT_MATMUL_DTYPE = "auto"

_R_BYTES_CAP = 2 * 1024 * 1024     # cap on the merge replication matrix


def _resolve_matmul_dtype(md):
    if md != "auto":
        return md
    try:
        kind = jax.devices()[0].device_kind.lower()
    except Exception:  # pragma: no cover
        return None
    return jnp.bfloat16 if ("v6" in kind or "v7" in kind) else None


# ----------------------------------------------------------------------------
# Generation-aware VMEM budgeting (v7x: 64 MiB physical, v5e/v6e: 128 MiB).
# ----------------------------------------------------------------------------
@functools.lru_cache(maxsize=None)
def _vmem_limit_bytes():
    try:
        cap = int(pltpu.get_tpu_info().vmem_capacity_bytes)
    except Exception:  # pragma: no cover - conservative fallback
        cap = 128 * 1024 * 1024
    return int(min(cap * 3 // 4, 96 * 1024 * 1024))


def _budget():
    # Accounted per-kernel working set (blocks x double buffering + scratch +
    # live f32 temps) is kept under ~half the scoped-VMEM limit.
    return _vmem_limit_bytes() // 2


def _compiler_params():
    return pltpu.CompilerParams(
        dimension_semantics=("parallel", "parallel"),
        vmem_limit_bytes=_vmem_limit_bytes(),
    )


def _itemsize(dt):
    return jnp.dtype(dt).itemsize


def _round_up(x, m):
    return ((x + m - 1) // m) * m


def _pick_col_tile(S, bytes_per_col, budget):
    """Lane-dense column tile: a multiple of 128, or the full extent."""
    if S <= 256 or S * bytes_per_col <= budget:
        return S
    t = (budget // max(bytes_per_col, 1)) // 128 * 128
    t = max(128, min(t, (S // 128) * 128, 1 << 15))
    return int(t)


def _pick_row_tile(H, W, bytes_fn, budget):
    """Rows per spatial tile: rows*W must be a multiple of 128 lanes, or the
    tile must cover the full image.  Largest power-of-two multiple of the
    minimum legal tile whose accounted working set fits the budget."""
    if bytes_fn(H) <= budget:
        return H
    t0 = 128 // math.gcd(W, 128)
    if t0 >= H:
        return H
    th = t0
    while th * 2 <= H and bytes_fn(th * 2) <= budget:
        th *= 2
    return th


# ----------------------------------------------------------------------------
# Kernel 1: 1x1 conv (no bias) + BN + ReLU in NCHW (spatial on the lane axis).
# ----------------------------------------------------------------------------
def _conv1x1_kernel(x_ref, w_ref, s_ref, b_ref, o_ref, *, matmul_dtype):
    x = x_ref[0]
    if matmul_dtype is not None:
        x = x.astype(matmul_dtype)
    y = jnp.dot(w_ref[...], x, preferred_element_type=jnp.float32)
    y = y * s_ref[...] + b_ref[...]
    o_ref[0] = jnp.maximum(y, 0.0).astype(o_ref.dtype)


def conv1x1_bn_relu(x, w, scale, bias, *, matmul_dtype=None, out_dtype=None):
    """x: (N, Cin, S) NCHW-flattened; w: (Cout, Cin); scale/bias: (Cout, 1)."""
    N, Cin, S = x.shape
    Cout = w.shape[0]
    out_dtype = out_dtype or x.dtype
    cdt = jnp.dtype(matmul_dtype) if matmul_dtype is not None else jnp.dtype(x.dtype)
    # Accounted bytes per spatial column (double-buffered blocks + f32 temp).
    bpc = (2 * Cin * _itemsize(x.dtype) + 2 * Cout * _itemsize(out_dtype)
           + 4 * Cout)
    tS = _pick_col_tile(S, bpc, _budget())
    return pl.pallas_call(
        functools.partial(_conv1x1_kernel, matmul_dtype=matmul_dtype),
        out_shape=jax.ShapeDtypeStruct((N, Cout, S), out_dtype),
        grid=(N, pl.cdiv(S, tS)),
        in_specs=[
            pl.BlockSpec((1, Cin, tS), lambda n, j: (n, 0, j)),
            pl.BlockSpec((Cout, Cin), lambda n, j: (0, 0)),
            pl.BlockSpec((Cout, 1), lambda n, j: (0, 0)),
            pl.BlockSpec((Cout, 1), lambda n, j: (0, 0)),
        ],
        out_specs=pl.BlockSpec((1, Cout, tS), lambda n, j: (n, 0, j)),
        compiler_params=_compiler_params(),
    )(x, w.astype(cdt), scale, bias)


# ----------------------------------------------------------------------------
# Kernel 2: 1x1 conv + BN + ReLU with the top-down FPN merge FUSED:
#   out = relu(bn(conv1x1(x))) + nearest_upsample(coarse_lateral)
# The upsample is one MXU matmul against a static 0/1 replication matrix and
# the merged tile is written with a single lane-dense store.
# ----------------------------------------------------------------------------
def _conv1x1_merge_kernel(x_ref, w_ref, s_ref, b_ref, c_ref, r_ref, o_ref, *,
                          matmul_dtype):
    x = x_ref[0]
    if matmul_dtype is not None:
        x = x.astype(matmul_dtype)
    y = jnp.dot(w_ref[...], x, preferred_element_type=jnp.float32)
    y = jnp.maximum(y * s_ref[...] + b_ref[...], 0.0)

    # Nearest upsample of the already-merged coarser lateral: each fine column
    # copies exactly one coarse column (0/1 matrix), so the matmul is exact.
    c = c_ref[0]
    if c.dtype != r_ref.dtype:
        c = c.astype(r_ref.dtype)
    up = jnp.dot(c, r_ref[...], preferred_element_type=jnp.float32)
    o_ref[0] = (y + up).astype(o_ref.dtype)


def _merge_replication_matrix(thc, Wc, fh, fw, dtype):
    tSc = thc * Wc
    Wf = Wc * fw
    tSf = thc * fh * Wf
    pf = np.arange(tSf)
    src = (pf // Wf // fh) * Wc + (pf % Wf) // fw        # coarse flat index
    R = (np.arange(tSc)[:, None] == src[None, :]).astype(np.float32)
    return jnp.asarray(R, dtype=dtype)


def conv1x1_bn_relu_merge(x, w, scale, bias, coarse, coarse_hw, fine_hw, *,
                          matmul_dtype=None, out_dtype=None):
    """x: (N, Cin, Hf*Wf); coarse: (N, Cout, Hc*Wc) already-merged lateral.
    Returns None if the fused working set cannot be budgeted (caller falls
    back to the unfused path)."""
    N, Cin, Sf = x.shape
    Cout = w.shape[0]
    Hc, Wc = coarse_hw
    Hf, Wf = fine_hw
    fh, fw = Hf // Hc, Wf // Wc
    out_dtype = out_dtype or x.dtype
    rdt = jnp.dtype(matmul_dtype) if matmul_dtype is not None else jnp.dtype(coarse.dtype)
    wdt = jnp.dtype(matmul_dtype) if matmul_dtype is not None else jnp.dtype(x.dtype)

    def bytes_fn(thc):
        tSc = thc * Wc
        tSf = thc * fh * Wf
        r_bytes = tSc * tSf * _itemsize(rdt)
        if r_bytes > _R_BYTES_CAP:
            return 1 << 62
        return (2 * Cin * tSf * _itemsize(x.dtype)        # fine input blocks
                + 2 * Cout * tSf * _itemsize(out_dtype)   # output blocks
                + 2 * Cout * tSc * _itemsize(coarse.dtype)
                + 2 * r_bytes                             # replication matrix
                + 2 * Cout * tSf * 4                      # live f32 temps
                + 2 * Cout * Cin * _itemsize(wdt))

    thc = _pick_row_tile(Hc, Wc, bytes_fn, _budget())
    if bytes_fn(thc) > _vmem_limit_bytes():
        return None
    tSc = thc * Wc
    tSf = thc * fh * Wf
    T = pl.cdiv(Hc, thc)
    if Hc % thc:
        # Zero-pad the coarse rows so ragged last tiles never feed OOB garbage
        # into the replication matmul.
        coarse = jnp.pad(coarse, ((0, 0), (0, 0), (0, (T * thc - Hc) * Wc)))
    R = _merge_replication_matrix(thc, Wc, fh, fw, rdt)
    return pl.pallas_call(
        functools.partial(_conv1x1_merge_kernel, matmul_dtype=matmul_dtype),
        out_shape=jax.ShapeDtypeStruct((N, Cout, Sf), out_dtype),
        grid=(N, T),
        in_specs=[
            pl.BlockSpec((1, Cin, tSf), lambda n, i: (n, 0, i)),
            pl.BlockSpec((Cout, Cin), lambda n, i: (0, 0)),
            pl.BlockSpec((Cout, 1), lambda n, i: (0, 0)),
            pl.BlockSpec((Cout, 1), lambda n, i: (0, 0)),
            pl.BlockSpec((1, Cout, tSc), lambda n, i: (n, 0, i)),
            pl.BlockSpec((tSc, tSf), lambda n, i: (0, 0)),
        ],
        out_specs=pl.BlockSpec((1, Cout, tSf), lambda n, i: (n, 0, i)),
        compiler_params=_compiler_params(),
    )(x, w.astype(wdt), scale, bias, coarse, R)


# ----------------------------------------------------------------------------
# Kernel 3: 3x3 conv (pad=1, no bias) + BN + ReLU, spatially row-tiled.
# A halo-extended copy of the tile is assembled in VMEM once per step; all 9
# taps then accumulate over the full, lane-aligned (Cout, tS) tile.
# TODO(synk): v5e variant stacking {x, shift(x,-1), shift(x,+1)} into a
# (3*Cin, tS) operand (3 deeper-K matmuls per tile) is not implemented.
# ----------------------------------------------------------------------------
def _conv3x3_kernel(pos_ref, x_ref, w_ref, s_ref, b_ref, top_ref, bot_ref,
                    o_ref, acc_ref, ext_ref, *, H, W, th, L0, ragged,
                    compute_dtype):
    i = pl.program_id(1)
    tS = th * W

    # Halo-extended input tile:
    #   ext[:, L0-W : L0]        top halo row   (global row i*th - 1)
    #   ext[:, L0   : L0+tS]     the input tile (rows i*th .. i*th+th-1)
    #   ext[:, L0+tS: L0+tS+W]   bottom halo row (global row (i+1)*th)
    # L0 is 128-aligned so the big store and the dx==0 tap windows stay
    # lane-aligned; the 1-column guard slots at the ends are only ever read by
    # taps whose outputs are masked below.
    ext_ref[:, L0 - W:L0] = top_ref[0, 0].astype(compute_dtype)
    ext_ref[:, L0:L0 + tS] = x_ref[0].astype(compute_dtype)
    ext_ref[:, L0 + tS:L0 + tS + W] = bot_ref[0, 0].astype(compute_dtype)

    col = pos_ref[0:1, :]                                 # (1, tS): p % W
    col_ok = {-1: col >= 1, 0: None, 1: col <= W - 2}
    if ragged:
        # Only ragged last tiles have valid rows whose dy=+1 source row lies
        # outside the image; select (not multiply) keeps OOB garbage out.
        bot_ok = (pos_ref[1:2, :] + i * th + 1) < H       # (1, tS)

    # 9 taps grouped by dx: full-tile aligned accumulation, one column-wrap
    # select per group instead of per-tap full-tile compare/select passes.
    for dx in (-1, 0, 1):
        g = None
        for dy in (-1, 0, 1):
            off = L0 + dy * W + dx
            src = ext_ref[:, off:off + tS]                # (Cin, tS)
            c = jnp.dot(w_ref[dy + 1, dx + 1], src,
                        preferred_element_type=jnp.float32)
            if ragged and dy == 1:
                c = jnp.where(bot_ok, c, 0.0)
            g = c if g is None else g + c
        if col_ok[dx] is not None:
            g = jnp.where(col_ok[dx], g, 0.0)
        if dx == -1:
            acc_ref[...] = g
        else:
            acc_ref[...] = acc_ref[...] + g

    y = acc_ref[...] * s_ref[...] + b_ref[...]
    o_ref[0] = jnp.maximum(y, 0.0).astype(o_ref.dtype)


def conv3x3_bn_relu(x, H, W, w, scale, bias, *, matmul_dtype=None,
                    out_dtype=None):
    """x: (N, Cin, H*W) NCHW-flat; w: (3,3,Cout,Cin); scale/bias: (Cout,1)."""
    N, Cin, S = x.shape
    Cout = w.shape[2]
    assert S == H * W
    out_dtype = out_dtype or x.dtype
    cdt = jnp.dtype(matmul_dtype) if matmul_dtype is not None else jnp.dtype(x.dtype)
    L0 = _round_up(W + 1, 128)

    def bytes_fn(th):
        tS = th * W
        return (2 * Cin * tS * _itemsize(x.dtype)         # input blocks
                + 2 * Cout * tS * _itemsize(out_dtype)    # output blocks
                + 4 * Cin * W * _itemsize(x.dtype)        # halo row blocks
                + Cin * (L0 + tS + W + 128) * _itemsize(cdt)   # ext scratch
                + 3 * Cout * tS * 4                       # acc scratch + temps
                + 18 * Cout * Cin * _itemsize(cdt)        # weights
                + 4 * tS * 4)                             # pos

    th = _pick_row_tile(H, W, bytes_fn, _budget())
    tS = th * W
    T = pl.cdiv(H, th)

    # 1-row top/bottom halos per row tile (zeros at the image borders): 2 rows
    # per tile instead of a full-image padding pass in HBM.
    # TODO(synk): could be replaced by overlapping (th+2)-row input DMAs.
    x4 = x.reshape(N, Cin, H, W)
    zrow = jnp.zeros((N, 1, Cin, W), x.dtype)
    if T > 1:
        tops = jnp.transpose(x4[:, :, th - 1::th, :][:, :, :T - 1, :],
                             (0, 2, 1, 3))
        bots = jnp.transpose(x4[:, :, th::th, :][:, :, :T - 1, :],
                             (0, 2, 1, 3))
        top_h = jnp.concatenate([zrow, tops], axis=1)     # (N, T, Cin, W)
        bot_h = jnp.concatenate([bots, zrow], axis=1)     # (N, T, Cin, W)
    else:
        top_h, bot_h = zrow, zrow

    # Static per-tile positions (column, row-within-tile): avoids in-kernel
    # vector integer div/mod; the block index is constant so it is DMA'd once.
    pos = jnp.asarray(np.stack([np.arange(tS) % W,
                                np.arange(tS) // W]).astype(np.int32))

    kernel = functools.partial(_conv3x3_kernel, H=H, W=W, th=th, L0=L0,
                               ragged=bool(H % th), compute_dtype=cdt)
    return pl.pallas_call(
        kernel,
        out_shape=jax.ShapeDtypeStruct((N, Cout, S), out_dtype),
        grid=(N, T),
        in_specs=[
            pl.BlockSpec((2, tS), lambda n, i: (0, 0)),
            pl.BlockSpec((1, Cin, tS), lambda n, i: (n, 0, i)),
            pl.BlockSpec((3, 3, Cout, Cin), lambda n, i: (0, 0, 0, 0)),
            pl.BlockSpec((Cout, 1), lambda n, i: (0, 0)),
            pl.BlockSpec((Cout, 1), lambda n, i: (0, 0)),
            pl.BlockSpec((1, 1, Cin, W), lambda n, i: (n, i, 0, 0)),
            pl.BlockSpec((1, 1, Cin, W), lambda n, i: (n, i, 0, 0)),
        ],
        out_specs=pl.BlockSpec((1, Cout, tS), lambda n, i: (n, 0, i)),
        scratch_shapes=[pltpu.VMEM((Cout, tS), jnp.float32),
                        pltpu.VMEM((Cin, L0 + tS + W + 1), cdt)],
        compiler_params=_compiler_params(),
    )(pos, x, w.astype(cdt), scale, bias, top_h, bot_h)


# ----------------------------------------------------------------------------
# Fallback (non-integer resize ratios / un-budgetable merge tiles): XLA
# nearest gather + a tiled, lane-dense Pallas add.
# ----------------------------------------------------------------------------
def _add_kernel(a_ref, b_ref, o_ref):
    o_ref[...] = a_ref[...] + b_ref[...]


def elementwise_add(a, b):
    shape = a.shape
    L = shape[-1]
    a2 = a.reshape(-1, L)
    b2 = b.reshape(-1, L)
    M = a2.shape[0]
    tm = M if M <= 1024 else 1024
    tl = L if (L % 128 != 0 or L <= 4096) else 4096
    out = pl.pallas_call(
        _add_kernel,
        out_shape=jax.ShapeDtypeStruct((M, L), a.dtype),
        grid=(pl.cdiv(M, tm), pl.cdiv(L, tl)),
        in_specs=[pl.BlockSpec((tm, tl), lambda i, j: (i, j)),
                  pl.BlockSpec((tm, tl), lambda i, j: (i, j))],
        out_specs=pl.BlockSpec((tm, tl), lambda i, j: (i, j)),
        compiler_params=_compiler_params(),
    )(a2, b2)
    return out.reshape(shape)


def nearest_resize_nchw(x, out_h, out_w):
    N, C, H, W = x.shape
    hi = jnp.clip(jnp.floor(jnp.arange(out_h) * (H / out_h)).astype(jnp.int32),
                  0, H - 1)
    wi = jnp.clip(jnp.floor(jnp.arange(out_w) * (W / out_w)).astype(jnp.int32),
                  0, W - 1)
    return x[:, :, hi][:, :, :, wi]


# ----------------------------------------------------------------------------
# Parameter init (deterministic, mirrors the PyTorch __init__).
# ----------------------------------------------------------------------------
def init_fpn_params(key, in_channels, out_channels, out_ids):
    params = {"lateral": [], "fpn": []}
    n_lat = len(in_channels)
    n_fpn = sum(1 for i in range(n_lat) if i in out_ids)
    keys = jax.random.split(key, n_lat + max(n_fpn, 1))
    # BN (gamma=1, beta=0, mean=0, var=1) folded into per-channel scale/bias.
    bn_scale = jnp.full((out_channels, 1), 1.0 / np.sqrt(1.0 + BN_EPS),
                        jnp.float32)
    bn_bias = jnp.zeros((out_channels, 1), jnp.float32)
    ki = 0
    for in_c in in_channels:
        # kaiming_normal_(mode='fan_out', relu): std = sqrt(2 / (Cout*kh*kw))
        std = (2.0 / (out_channels * 1 * 1)) ** 0.5
        w = std * jax.random.normal(keys[ki], (out_channels, in_c), jnp.float32)
        ki += 1
        params["lateral"].append({"w": w, "scale": bn_scale, "bias": bn_bias})
    for idx in range(n_lat):
        if idx not in out_ids:
            continue
        std = (2.0 / (out_channels * 3 * 3)) ** 0.5
        w = std * jax.random.normal(keys[ki],
                                    (3, 3, out_channels, out_channels),
                                    jnp.float32)
        ki += 1
        params["fpn"].append({"w": w, "scale": bn_scale, "bias": bn_bias})
    return params


# ----------------------------------------------------------------------------
# FPN forward (inputs/outputs NCHW -- matches the PyTorch module).
# ----------------------------------------------------------------------------
def fpn_forward(inputs_nchw, params, out_ids, *,
                matmul_dtype=DEFAULT_MATMUL_DTYPE):
    assert len(inputs_nchw) == len(params["lateral"])
    matmul_dtype = _resolve_matmul_dtype(matmul_dtype)
    in_dtype = inputs_nchw[0].dtype
    lat_dtype = matmul_dtype or in_dtype      # bf16 laterals halve the 3x3 DMA

    shapes = [x.shape for x in inputs_nchw]                       # (N, C, H, W)
    xs = [x.reshape(x.shape[0], x.shape[1], -1) for x in inputs_nchw]
    L = len(xs)
    laterals = [None] * L

    pL = params["lateral"][L - 1]
    laterals[L - 1] = conv1x1_bn_relu(xs[L - 1], pL["w"], pL["scale"],
                                      pL["bias"], matmul_dtype=matmul_dtype,
                                      out_dtype=lat_dtype)
    # Top-down: nearest-upsample + add of the already-merged coarser lateral,
    # fused into the finer level's conv1x1 epilogue.  The add happens AFTER
    # the lateral conv+BN+ReLU, exactly like the PyTorch reference.
    for i in range(L - 2, -1, -1):
        p = params["lateral"][i]
        N, _, Hf, Wf = shapes[i]
        Hc, Wc = shapes[i + 1][2:]
        merged = None
        if Hf % Hc == 0 and Wf % Wc == 0:
            merged = conv1x1_bn_relu_merge(
                xs[i], p["w"], p["scale"], p["bias"], laterals[i + 1],
                (Hc, Wc), (Hf, Wf), matmul_dtype=matmul_dtype,
                out_dtype=lat_dtype)
        if merged is None:
            # TODO(synk): non-integer nearest-resize ratios (or un-budgetable
            # merge tiles) fall back to an XLA gather + tiled Pallas add.
            lat = conv1x1_bn_relu(xs[i], p["w"], p["scale"], p["bias"],
                                  matmul_dtype=matmul_dtype,
                                  out_dtype=lat_dtype)
            up = nearest_resize_nchw(
                laterals[i + 1].reshape(N, -1, Hc, Wc), Hf, Wf)
            merged = elementwise_add(lat, up.reshape(N, -1, Hf * Wf))
        laterals[i] = merged

    outs = []
    for j, i in enumerate(out_ids):   # params["fpn"][j] belongs to out_ids[j]
        p = params["fpn"][j]
        N, _, H, W = shapes[i]
        y = conv3x3_bn_relu(laterals[i], H, W, p["w"], p["scale"], p["bias"],
                            matmul_dtype=matmul_dtype, out_dtype=in_dtype)
        outs.append(y.reshape(N, -1, H, W))                       # NCHW
    return outs


# ----------------------------------------------------------------------------
# Pure-JAX (XLA) reference for self-verification.
# ----------------------------------------------------------------------------
def fpn_reference(inputs_nchw, params, out_ids):
    dn = ("NCHW", "OIHW", "NCHW")

    def conv_bn_relu(x, w4, scale, bias, pad):
        y = lax.conv_general_dilated(x, w4, (1, 1), pad, dimension_numbers=dn)
        y = y * scale.reshape(1, -1, 1, 1) + bias.reshape(1, -1, 1, 1)
        return jnp.maximum(y, 0.0)

    lats = []
    for x, p in zip(inputs_nchw, params["lateral"]):
        w4 = p["w"][:, :, None, None]
        lats.append(conv_bn_relu(x, w4, p["scale"], p["bias"],
                                 [(0, 0), (0, 0)]))
    for i in range(len(lats) - 1, 0, -1):
        Hf, Wf = lats[i - 1].shape[2:]
        lats[i - 1] = nearest_resize_nchw(lats[i], Hf, Wf) + lats[i - 1]
    outs = []
    for j, i in enumerate(out_ids):
        p = params["fpn"][j]
        w4 = jnp.transpose(p["w"], (2, 3, 0, 1))
        outs.append(conv_bn_relu(lats[i], w4, p["scale"], p["bias"],
                                 [(1, 1), (1, 1)]))
    return outs


if __name__ == "__main__":
    key = jax.random.PRNGKey(0)
    in_channels = [4, 8]
    out_channels = 32
    out_ids = [0]

    k0, k1, kp = jax.random.split(key, 3)
    # Multi-level NCHW inputs (level 0 is the finest resolution).
    x0 = jax.random.normal(k0, (2, 4, 16, 16), jnp.float32)
    x1 = jax.random.normal(k1, (2, 8, 8, 8), jnp.float32)

    params = init_fpn_params(kp, in_channels, out_channels, out_ids)
    outs = fpn_forward([x0, x1], params, out_ids)
    outs = [jax.block_until_ready(o) for o in outs]
    assert outs[0].shape == (2, out_channels, 16, 16), outs[0].shape

    # Structural self-check against a pure-JAX (XLA) reference.  Tolerance is
    # loose enough to cover bf16 matmul operands on v6e/v7x (accumulation is
    # always f32) while still catching halo / upsample / masking bugs.
    refs = fpn_reference([x0, x1], params, out_ids)
    md = _resolve_matmul_dtype(DEFAULT_MATMUL_DTYPE)
    tol = 7e-2 if md == jnp.bfloat16 else 3e-2
    for o, r in zip(outs, refs):
        np.testing.assert_allclose(np.asarray(o, np.float32),
                                   np.asarray(r, np.float32),
                                   rtol=tol, atol=tol)
    print("KERNEL_OK")
</pallas_src>

<mosaic_0001>
module attributes {stable_mosaic.version = 11 : i64} {
  func.func @_conv1x1_kernel(%arg0: i32, %arg1: i32, %arg2: memref<1x8x64xf32, #tpu.memory_space<vmem>>, %arg3: memref<32x8xf32, #tpu.memory_space<vmem>>, %arg4: memref<32x1xf32, #tpu.memory_space<vmem>>, %arg5: memref<32x1xf32, #tpu.memory_space<vmem>>, %arg6: memref<1x32x64xf32, #tpu.memory_space<vmem>>) attributes {dimension_semantics = [#tpu.dimension_semantics<parallel>, #tpu.dimension_semantics<parallel>], iteration_bounds = array<i64: 2, 1>, scalar_prefetch = 0 : i64, scratch_operands = 0 : i64, tpu.core_type = #tpu.core_type<tc>, window_params = [{transform_indices = @transform_0, window_bounds = array<i64: 1, 8, 64>}, {pipeline_mode = #tpu.pipeline_mode<synchronous>, transform_indices = @transform_1, window_bounds = array<i64: 32, 8>}, {pipeline_mode = #tpu.pipeline_mode<synchronous>, transform_indices = @transform_2, window_bounds = array<i64: 32, 1>}, {pipeline_mode = #tpu.pipeline_mode<synchronous>, transform_indices = @transform_3, window_bounds = array<i64: 32, 1>}, {transform_indices = @transform_4, window_bounds = array<i64: 1, 32, 64>}]} {
    %c0 = arith.constant 0 : index
    %c0_0 = arith.constant 0 : index
    %c0_1 = arith.constant 0 : index
    %0 = vector.load %arg2[%c0, %c0_0, %c0_1] : memref<1x8x64xf32, #tpu.memory_space<vmem>>, vector<1x8x64xf32>
    %1 = vector.shape_cast %0 : vector<1x8x64xf32> to vector<8x64xf32>
    %c0_2 = arith.constant 0 : index
    %c0_3 = arith.constant 0 : index
    %2 = vector.load %arg3[%c0_2, %c0_3] : memref<32x8xf32, #tpu.memory_space<vmem>>, vector<32x8xf32>
    %cst = arith.constant dense<0.000000e+00> : vector<32x64xf32>
    %3 = tpu.matmul %2, %1, %cst {dimension_numbers = #tpu.dot_dimension_numbers<[1], [0], [0], [1], [0, 0, 1, 1], [], []>} : vector<32x8xf32>, vector<8x64xf32>, vector<32x64xf32> -> vector<32x64xf32>
    %c0_4 = arith.constant 0 : index
    %c0_5 = arith.constant 0 : index
    %4 = vector.load %arg4[%c0_4, %c0_5] : memref<32x1xf32, #tpu.memory_space<vmem>>, vector<32x1xf32>
    %5 = vector.broadcast %4 : vector<32x1xf32> to vector<32x64xf32>
    %6 = arith.mulf %3, %5 : vector<32x64xf32>
    %c0_6 = arith.constant 0 : index
    %c0_7 = arith.constant 0 : index
    %7 = vector.load %arg5[%c0_6, %c0_7] : memref<32x1xf32, #tpu.memory_space<vmem>>, vector<32x1xf32>
    %8 = vector.broadcast %7 : vector<32x1xf32> to vector<32x64xf32>
    %9 = arith.addf %6, %8 : vector<32x64xf32>
    %cst_8 = arith.constant 0.000000e+00 : f32
    %10 = vector.broadcast %cst_8 : f32 to vector<32x64xf32>
    %11 = arith.maximumf %9, %10 : vector<32x64xf32>
    %c0_9 = arith.constant 0 : index
    %c0_10 = arith.constant 0 : index
    %c0_11 = arith.constant 0 : index
    %12 = vector.load %arg6[%c0_9, %c0_10, %c0_11] : memref<1x32x64xf32, #tpu.memory_space<vmem>>, vector<1x32x64xf32>
    %13 = vector.shape_cast %12 : vector<1x32x64xf32> to vector<32x64xf32>
    %14 = vector.shape_cast %11 : vector<32x64xf32> to vector<1x32x64xf32>
    tpu.vector_store %arg6[%c0_9, %c0_10, %c0_11], %14 {strides = array<i32>} : memref<1x32x64xf32, #tpu.memory_space<vmem>>, vector<1x32x64xf32>,
    return
  }
  func.func @transform_0(%arg0: i32, %arg1: i32) -> (i32, i32, i32) {
    %c0_i32 = arith.constant 0 : i32
    %c0_i32_0 = arith.constant 0 : i32
    return %arg0, %c0_i32, %arg1 : i32, i32, i32
  }
  func.func @transform_1(%arg0: i32, %arg1: i32) -> (i32, i32) {
    %c0_i32 = arith.constant 0 : i32
    %c0_i32_0 = arith.constant 0 : i32
    %c0_i32_1 = arith.constant 0 : i32
    return %c0_i32, %c0_i32_0 : i32, i32
  }
  func.func @transform_2(%arg0: i32, %arg1: i32) -> (i32, i32) {
    %c0_i32 = arith.constant 0 : i32
    %c0_i32_0 = arith.constant 0 : i32
    %c0_i32_1 = arith.constant 0 : i32
    return %c0_i32, %c0_i32_0 : i32, i32
  }
  func.func @transform_3(%arg0: i32, %arg1: i32) -> (i32, i32) {
    %c0_i32 = arith.constant 0 : i32
    %c0_i32_0 = arith.constant 0 : i32
    %c0_i32_1 = arith.constant 0 : i32
    return %c0_i32, %c0_i32_0 : i32, i32
  }
  func.func @transform_4(%arg0: i32, %arg1: i32) -> (i32, i32, i32) {
    %c0_i32 = arith.constant 0 : i32
    %c0_i32_0 = arith.constant 0 : i32
    return %arg0, %c0_i32, %arg1 : i32, i32, i32
  }
}

</mosaic_0001>

<bundles_post_ra>
// kernel: tpu_custom_call.1
= control target key start
LH: loop header
LB: loop body
LE: loop exit
PB: predicated region body
PF: predicated region fallthrough
CT: control target
= control target key end

     0   :  { %9 = vsyncpa [#allocation3], 0  ;;  %s1238_s0 = inlined_call_operand.hbm [shape: f32[2,8,64], index: 0, kind: input, shape index: {}]   ;;  %s1239_s1 = inlined_call_operand.hbm [shape: f32[32,8], index: 1, kind: input, shape index: {}]   ;;  %s1240_s2 = inlined_call_operand.hbm [shape: f32[32,1], index: 2, kind: input, shape index: {}]   ;;  %s1241_s3 = inlined_call_operand.hbm [shape: f32[32,1], index: 3, kind: input, shape index: {}]   ;;  %s1242_s4 = inlined_call_operand.hbm [shape: f32[2,32,64], index: 4, kind: output, shape index: {}]  }
   0x1   :  { %11 = vsyncpa [#allocation3 + $0x1], 0 }
   0x2   :  { %12 = vsyncpa [#allocation6], 0 }
   0x3   :  { %13 = vsyncpa [#allocation9], 0 }
   0x4   :  { %14 = vsyncpa [#allocation4], 0 }
   0x5   :  { %16 = vsyncpa [#allocation4 + $0x1], 0  ;;  %s951_s15 = smov 0   ;;  %s953_s16 = smov 0  }
   0x6   :  { %s955_s17 = smov 0   ;;  %s957_s18 = smov 0  }
   0x7   :  { %s959_s19 = smov 0   ;;  %s961_s20 = smov 0  }
   0x8 LB: > { %s570_s21 = sadd.s32 4294967295, %s914_s20   ;;  %s571_s22 = sadd.s32 4294967294, %s914_s20   ;;  %s914_s20 = sphi %s961_s20, %s22_s20   ;;  %s910_s19 = sphi %s959_s19, %s1269_s19   ;;  %s906_s18 = sphi %s957_s18, %s1268_s18   ;;  %s902_s17 = sphi %s955_s17, %s1267_s17   ;;  %s898_s16 = sphi %s953_s16, %s1266_s16   ;;  %s894_s15 = sphi %s951_s15, %s1265_s15  }
   0x9   : > { %p56_p0 = scmp.ne.s32.totalorder %s898_s16, %s894_s15  ;;  %p985_p1 = scmp.eq.s32.totalorder %s570_s21, 0 }
   0xa   : > { %p989_p2 = scmp.eq.s32.totalorder %s570_s21, 1  ;;  %p151_p3 = scmp.eq.s32.totalorder %s571_s22, 1 }
   0xb   : > { %s1248_s23 = scalar_select %p985_p1, 1, 0 }
   0xc   : > { %s1249_s24 = scalar_select %p989_p2, 1, 0 }
   0xd   : > { %p995_p4 = por %p985_p1, %p56_p0  ;;  %p572_p5 = scmp.ge.s32.totalorder %s914_s20, 1 }
   0xe   : > { %p1000_p6 = por %p151_p3, %p56_p0  ;;  %p158_p7 = scmp.lt.s32.totalorder %s914_s20, 3 }
   0xf   : > { %s1250_s25 = scalar_select %p995_p4, 1, 0 }
  0x10   : > { %s1251_s26 = scalar_select %p1000_p6, 1, 0 }
  0x11   : > { %p1005_p8 = pnand %p572_p5, %p158_p7  ;;  %s916_s28 = smov [#allocation5]  }
  0x12   : > { %1252 = sst [smem:[#allocation15_spill]] %s1251_s26  ;;  %s170_s29 = sshll.u32 %s916_s28, 4  ;;  %s1009_s29 = int_to_ptr.vmem [resolvable:$true] %s170_s29 }
  0x13   : > { %s1253_s27 = scalar_select %p1005_p8, 1, 0 }
  0x14   : > { %p626_p9 = pneg %p1005_p8  ;;  %s917_s5 = smov [#allocation7]  }
  0x15   : > { %s183_s6 = sshll.u32 %s917_s5, 4  ;;  %s918_s7 = smov [#allocation8]   ;;  %s1020_s6 = int_to_ptr.vmem [resolvable:$true] %s183_s6 }
  0x16   : > { %p1016_p11 = pnand %p626_p9, %p985_p1  ;;  %s1022_s8 = sshll.u32 %s918_s7, 4  ;;  %s197_s8 = int_to_ptr.vmem [resolvable:$true] %s1022_s8 }
  0x17   : > { %s710_s11 = scalar_lea.hbm %s1239_s1, 512 }
  0x18   : > { %p711_p12 = scmp.ne.s32.totalorder %s1239_s1, %s710_s11  ;;  %p1032_p13 = pneg %p1016_p11 }
  0x19   : > { %p717_p5 = scmp.lt.u32.totalorder %s710_s11, %s1239_s1 }
  0x1a   : > { %p713_p0 = pnand %p1032_p13, %p711_p12 }
  0x1c   : > { %p714_p3 = pneg %p713_p0 }
  0x1e   : > { %p719_p7 = pnand %p717_p5, %p714_p3 }
  0x20   : > { %722 = shalt.err (!%p719_p7)
}
  0x21   : > { %s723_s28 = scalar_lea.vmem %s1009_s29, 512  ;;  %p731_p1 = scmp.lt.s32.totalorder %s1009_s29, %s1009_s29 }
  0x22   : > { %p724_p9 = scmp.ne.s32.totalorder %s1009_s29, %s723_s28  ;;  %p732_p4 = scmp.lt.s32.totalorder %s723_s28, %s723_s28 }
  0x24   : > { %p726_p10 = pnand %p724_p9, %p1032_p13  ;;  %p733_p12 = por %p732_p4, %p731_p1 }
  0x26   : > { %p727_p6 = pneg %p726_p10 }
  0x28   : > { %p734_p0 = pnand %p733_p12, %p727_p6 }
  0x2a   : > { %737 = shalt.err (!%p734_p0)
}
  0x2b   : > { %s919_s5 = smov 128   ;;  %s920_s7 = smov 8  }
  0x2c   : > { %629 = dma.hbm_to_vmem [thread:$0]  (!%p1016_p11), %s1239_s1, 512, %s1009_s29, [#allocation6], %s919_s5, %s919_s5, %s920_s7  }
  0x2d   : > { %s738_s13 = scalar_lea.hbm %s1240_s2, 512 }
  0x2e   : > { %p739_p1 = scmp.ne.s32.totalorder %s1240_s2, %s738_s13  ;;  %p745_p10 = scmp.lt.u32.totalorder %s738_s13, %s1240_s2 }
  0x30   : > { %p741_p4 = pnand %p739_p1, %p1032_p13 }
  0x32   : > { %p742_p6 = pneg %p741_p4 }
  0x34   : > { %p747_p3 = pnand %p745_p10, %p742_p6 }
  0x36   : > { %750 = shalt.err (!%p747_p3)
}
  0x37   : > { %s751_s29 = scalar_lea.vmem %s1020_s6, 512  ;;  %p759_p12 = scmp.lt.s32.totalorder %s1020_s6, %s1020_s6 }
  0x38   : > { %p752_p5 = scmp.ne.s32.totalorder %s1020_s6, %s751_s29  ;;  %p760_p0 = scmp.lt.s32.totalorder %s751_s29, %s751_s29 }
  0x3a   : > { %p754_p7 = pnand %p752_p5, %p1032_p13  ;;  %p761_p1 = por %p760_p0, %p759_p12 }
  0x3c   : > { %p755_p9 = pneg %p754_p7 }
  0x3e   : > { %p762_p4 = pnand %p761_p1, %p755_p9 }
  0x40   : > { %765 = shalt.err (!%p762_p4)
}
  0x41   : > { %632 = dma.hbm_to_vmem [thread:$0]  (!%p1016_p11), %s1240_s2, 512, %s1020_s6, [#allocation6], %s919_s5, %s919_s5, %s920_s7  }
  0x42   : > { %s766_s12 = scalar_lea.hbm %s1241_s3, 512 }
  0x43   : > { %p767_p6 = scmp.ne.s32.totalorder %s1241_s3, %s766_s12  ;;  %p773_p5 = scmp.lt.u32.totalorder %s766_s12, %s1241_s3 }
  0x45   : > { %p769_p10 = pnand %p767_p6, %p1032_p13 }
  0x47   : > { %p770_p3 = pneg %p769_p10 }
  0x49   : > { %p775_p7 = pnand %p773_p5, %p770_p3 }
  0x4b   : > { %778 = shalt.err (!%p775_p7)
}
  0x4c   : > { %s779_s29 = scalar_lea.vmem %s197_s8, 512  ;;  %p787_p1 = scmp.lt.s32.totalorder %s197_s8, %s197_s8 }
  0x4d   : > { %p780_p9 = scmp.ne.s32.totalorder %s197_s8, %s779_s29  ;;  %p788_p4 = scmp.lt.s32.totalorder %s779_s29, %s779_s29 }
  0x4f   : > { %p782_p12 = pnand %p780_p9, %p1032_p13  ;;  %p789_p8 = por %p788_p4, %p787_p1 }
  0x51   : > { %p783_p0 = pneg %p782_p12 }
  0x53   : > { %p790_p2 = pnand %p789_p8, %p783_p0 }
  0x55   : > { %793 = shalt.err (!%p790_p2)
}
  0x56   : > { %635 = dma.hbm_to_vmem [thread:$0]  (!%p1016_p11), %s1241_s3, 512, %s197_s8, [#allocation9], %s919_s5, %s919_s5, %s920_s7  }
  0x57   : > { %s43_s14 = sadd.s32 1, %s902_s17  ;;  %s34_s30 = sadd.s32 1, %s910_s19 }
  0x58   : > { %p50_p2 = scmp.ne.s32.totalorder %s902_s17, %s898_s16  ;;  %p36_p8 = scmp.ge.s32.totalorder %s34_s30, 2 }
  0x59   : > { %p51_p13 = scmp.eq.s32.totalorder %s914_s20, 0  ;;  %p1256_p6 = scmp.ne.s32.totalorder %s1249_s24, 0 }
  0x5a   : > { %p647_p3 = scmp.lt.s32.totalorder %s914_s20, 2  ;;  %s1271_s30 = smov (%p36_p8, %s34_s30), 0 }
  0x5b   : > { %p1111_p10 = por %p1256_p6, %p50_p2  ;;  %p52_p5 = por %p51_p13, %p50_p2 }
  0x5c   : > { %s210_s10 = sand.u32 1, %s902_s17   ;;  %s38_s11 = ssub.s32 %s910_s19, %s1271_s30 }
  0x5d   : > { %p41_p7 = scmp.eq.s32.totalorder %s38_s11, 0  ;;  %s577_s8 = sshll.u32 %s210_s10, 3 }
  0x5e   : > { %s578_s5 = sshll.u32 %s910_s19, 7  ;;  %s214_s21 = scalar_lea.vmem [#allocation2], %s577_s8 }
  0x5f   : > { %s1123_s7 = scalar_select %p41_p7, %s902_s17, %s43_s14  }
  0x60   : > { %s1128_s24 = scalar_lea.hbm %s1238_s0, %s578_s5  ;;  %s222_s22 = sshll.u32 %s214_s21, 4  ;;  %s1130_s22 = int_to_ptr.vmem [resolvable:$true] %s222_s22 }
  0x61   : > { %p1134_p11 = pnand %p647_p3, %p52_p5  ;;  %s211_s29 = scalar_lea.sflag [#allocation3], %s210_s10 }
  0x62   : > { %s794_s6 = scalar_lea.hbm %s1128_s24, 128  ;;  %s799_s11 = scalar_lea.hbm %s1238_s0, 256 }
  0x63   : > { %p795_p9 = scmp.ne.s32.totalorder %s1128_s24, %s794_s6  ;;  %p796_p12 = pneg %p1134_p11 }
  0x64   : > { %p800_p4 = scmp.lt.u32.totalorder %s1128_s24, %s1238_s0  ;;  %p801_p2 = scmp.lt.u32.totalorder %s799_s11, %s794_s6 }
  0x65   : > { %p797_p0 = pnand %p796_p12, %p795_p9  ;;  %p803_p13 = scmp.lt.u32.totalorder %s794_s6, %s1128_s24 }
  0x66   : > { %p802_p8 = por %p801_p2, %p800_p4 }
  0x67   : > { %p798_p1 = pneg %p797_p0 }
  0x68   : > { %p804_p6 = por %p803_p13, %p802_p8 }
  0x6a   : > { %p805_p3 = pnand %p804_p6, %p798_p1 }
  0x6c   : > { %808 = shalt.err (!%p805_p3)
}
  0x6d   : > { %s809_s10 = scalar_lea.vmem %s1130_s22, 128  ;;  %s921_s12 = smov [#allocation2]  }
  0x6e   : > { %p810_p5 = scmp.ne.s32.totalorder %s1130_s22, %s809_s10  ;;  %s814_s13 = sshll.u32 %s921_s12, 4  ;;  %s815_s13 = int_to_ptr.vmem [resolvable:$false] %s814_s13 }
  0x6f   : > { %s816_s21 = scalar_lea.vmem %s815_s13, 256  ;;  %p817_p0 = scmp.lt.s32.totalorder %s1130_s22, %s815_s13 }
  0x70   : > { %p812_p7 = pnand %p810_p5, %p796_p12  ;;  %p818_p4 = scmp.lt.s32.totalorder %s816_s21, %s809_s10 }
  0x72   : > { %p813_p9 = pneg %p812_p7  ;;  %p819_p2 = por %p818_p4, %p817_p0 }
  0x74   : > { %p820_p8 = pnand %p819_p2, %p813_p9 }
  0x76   : > { %823 = shalt.err (!%p820_p8)
}
  0x77   : > { %639 = dma.hbm_to_vmem [thread:$0]  (!%p1134_p11), %s1128_s24, 128, %s1130_s22, %s211_s29  }
  0x78   : > { %p1259_p1 = scmp.ne.s32.totalorder %s1253_s27, 0 }
  0x79   : > { %s1166_s6 = sand.u32 (!%p1259_p1), 1, %s898_s16   ;;  %p1260_p12 = scmp.ne.s32.totalorder (!%p1259_p1), %s1250_s25, 0 }
  0x7a   : > { %231 = sbr.rel (%p1259_p1) target bundleno = 374 (0x176), region = 36  ;;  %s580_s26 = sshll.u32 (!%p1259_p1), %s1166_s6, 3 }
  0x7b   : > { %s234_s14 = scalar_lea.sflag (!%p1259_p1), [#allocation3], %s1166_s6  ;;  %s237_s11 = scalar_lea.vmem (!%p1259_p1), [#allocation2], %s580_s26 }
  0x81   : > { %877 = dma.done.wait (%p1260_p12), %s234_s14, 128  }
  0x82   : > { %879 = vsyncadd (%p1260_p12), %s234_s14, 4294967168  ;;  %p1261_p13 = scmp.ne.s32.totalorder %s1248_s23, 0 }
  0x84   : > { %881 = dma.done.wait (%p1261_p13), [#allocation6], 1024  }
  0x85   : > { %883 = vsyncadd (%p1261_p13), [#allocation6], 4294966272 }
  0x86   : > { %885 = dma.done.wait (%p1261_p13), [#allocation9], 512  }
  0x87   : > { %887 = vsyncadd (%p1261_p13), [#allocation9], 4294966784  ;;  %v922_v0 = vmov 0   ;;  %v274_v1 = vld [vmem:[%s237_s11] sm:$0xff]  ;;  %v275_v2 = vld [vmem:[#allocation5] sm:$0xff]  ;;  %vm279_vm0 = vcmask 64512  }
  0x88   : > { %709 = vset.pattern.permute.xlu1 %v922_v0  ;;  %708 = vset.pattern.permute.xlu0 %v922_v0  ;;  %v277_v3 = vld [vmem:[#allocation5 + $0x10] sm:$0xff]  ;;  %v276_v4 = vld [vmem:[#allocation5 + $0x8] sm:$0xff]  ;;  %v278_v5 = vld [vmem:[#allocation5 + $0x18] sm:$0xff]  ;;  %s584_s23 = sshll.u32 %s1166_s6, 5  ;;  %s594_s24 = sshll.u32 %s906_s18, 9  ;;  %vm437_vm1 = vcmask 523264  }
  0x89   : > { %600 = vmatprep.subr.mxu0 %v274_v1  ;;  %608 = vmatprep.subr.mxu1 %v274_v1  ;;  %v379_v6 = vld [vmem:[#allocation7 + $0x10] sm:$0xff]  ;;  %v377_v7 = vld [vmem:[#allocation7] sm:$0xff]  ;;  %v380_v8 = vld [vmem:[#allocation7 + $0x18] sm:$0xff]  ;;  %s273_s25 = scalar_lea.vmem [#allocation10], %s584_s23  ;;  %s1189_s29 = scalar_lea.hbm %s1242_s4, %s594_s24 }
  0x8a   : > { %601 = vmatpush3.msra.mxu0 %v274_v1  ;;  %609 = vmatpush3.msra.mxu1 %v274_v1  ;;  %v378_v9 = vld [vmem:[#allocation7 + $0x8] sm:$0xff]  ;;  %v405_v11 = vld [vmem:[#allocation8] sm:$0xff]  ;;  %v408_v12 = vld [vmem:[#allocation8 + $0x18] sm:$0xff]  ;;  %s457_s27 = sshll.u32 %s273_s25, 4  ;;  %s443_s18 = scalar_lea.sflag [#allocation4], %s1166_s6  ;;  %s1184_s27 = int_to_ptr.vmem [resolvable:$true] %s457_s27 }
  0x8b   : > { %602 = vmatprep.mubr.msk.f32.mxu0 %vm279_vm0, %v275_v2  ;;  %605 = vmatprep.mubr.msk.f32.mxu1 %vm279_vm0, %v277_v3  ;;  %v406_v10 = vld [vmem:[#allocation8 + $0x8] sm:$0xff]  ;;  %v407_v13 = vld [vmem:[#allocation8 + $0x10] sm:$0xff]  ;;  %s824_s8 = scalar_lea.vmem %s1184_s27, 512  ;;  %s923_s5 = smov [#allocation10]  }
  0x8c   : > { %603 = vmatmul.mubr.msk.f32.vlgmr.msra.gmra.mrb[0].mxu0 %vm279_vm0, %v276_v4  ;;  %606 = vmatmul.mubr.msk.f32.vlgmr.msra.gmra.mrb[0].mxu1 %vm279_vm0, %v278_v5  ;;  %p825_p11 = scmp.ne.s32.totalorder %s1184_s27, %s824_s8  ;;  %s828_s10 = sshll.u32 %s923_s5, 4  ;;  %s829_s10 = int_to_ptr.vmem [resolvable:$false] %s828_s10 }
  0x8d   : > { %393 = vperm.xlu1 %709, %v379_v6   ;;  %383 = vperm.xlu0 %708, %v377_v7   ;;  %s830_s12 = scalar_lea.vmem %s829_s10, 1024  ;;  %p831_p5 = scmp.lt.s32.totalorder %s1184_s27, %s829_s10 }
  0x8e   : > { %p826_p6 = pnand %p825_p11, %p1111_p10  ;;  %p832_p7 = scmp.lt.s32.totalorder %s830_s12, %s824_s8 }
  0x90   : > { %p827_p3 = pneg %p826_p6  ;;  %p833_p9 = por %p832_p7, %p831_p5 }
  0x91   : > { %398 = vperm.xlu1 %709, %v380_v8   ;;  %388 = vperm.xlu0 %708, %v378_v9  }
  0x92   : > { %p834_p0 = pnand %p833_p9, %p827_p3 }
  0x95   : > { %416 = vperm.xlu1 %709, %v406_v10   ;;  %411 = vperm.xlu0 %708, %v405_v11  }
  0x99   : > { %426 = vperm.xlu1 %709, %v408_v12   ;;  %421 = vperm.xlu0 %708, %v407_v13  }
 0x10c   : > { %v394_v14 = vpop.permute.xlu1 %393  ;;  %v384_v15 = vpop.permute.xlu0 %383 }
 0x110   : > { %v399_v16 = vpop.permute.xlu1 %398  ;;  %v389_v17 = vpop.permute.xlu0 %388 }
 0x114   : > { %v417_v18 = vpop.permute.xlu1 %416  ;;  %v412_v19 = vpop.permute.xlu0 %411 }
 0x118   : > { %v427_v26 = vpop.permute.xlu1 %426  ;;  %v422_v29 = vpop.permute.xlu0 %421 }
 0x15f   : > { %v604_v20 = vpop.f32.mrb[0].mxu0  ;;  %v607_v21 = vpop.f32.mrb[0].mxu1 }
 0x160   : > { %v402_v22 = vmul.f32 %v604_v20, %v389_v17  ;;  %v404_v23 = vmul.f32 %v607_v21, %v399_v16  ;;  %v358_v24 = vpop.f32.mrb[1].mxu0  ;;  %v368_v25 = vpop.f32.mrb[1].mxu1 }
 0x161   : > { %v401_v27 = vmul.f32 %v384_v15, %v358_v24  ;;  %v403_v28 = vmul.f32 %v394_v14, %v368_v25 }
 0x162   : > { %v430_v30 = vadd.f32 %v417_v18, %v402_v22  ;;  %v432_v31 = vadd.f32 %v427_v26, %v404_v23 }
 0x163   : > { %v429_v32 = vadd.f32 %v412_v19, %v401_v27  ;;  %v431_v33 = vadd.f32 %v422_v29, %v403_v28 }
 0x164   : > { %v434_v34 = vmax.f32 %v430_v30, 0.0  ;;  %v436_v35 = vmax.f32 %v432_v31, 0.0 }
 0x165   : > { %v433_v36 = vmax.f32 %v429_v32, 0.0  ;;  %v435_v37 = vmax.f32 %v431_v33, 0.0 }
 0x166   : > { %439 = vst.msk [vmem:[%s273_s25 + $0x8] sm:$0xff] %vm437_vm1, %v434_v34  ;;  %441 = vst.msk [vmem:[%s273_s25 + $0x18] sm:$0xff] %vm437_vm1, %v436_v35 }
 0x167   : > { %438 = vst.msk [vmem:[%s273_s25] sm:$0xff] %vm437_vm1, %v433_v36  ;;  %440 = vst.msk [vmem:[%s273_s25 + $0x10] sm:$0xff] %vm437_vm1, %v435_v37 }
 0x168   : > { %837 = shalt.err (!%p834_p0)
}
 0x169   : > { %s838_s13 = scalar_lea.hbm %s1189_s29, 512  ;;  %s842_s14 = scalar_lea.hbm %s1242_s4, 1024 }
 0x16a   : > { %p839_p4 = scmp.ne.s32.totalorder %s1189_s29, %s838_s13  ;;  %p843_p1 = scmp.lt.u32.totalorder %s1189_s29, %s1242_s4 }
 0x16b   : > { %p844_p12 = scmp.lt.u32.totalorder %s842_s14, %s838_s13  ;;  %p846_p11 = scmp.lt.u32.totalorder %s838_s13, %s1189_s29 }
 0x16c   : > { %p840_p2 = pnand %p839_p4, %p1111_p10 }
 0x16d   : > { %p845_p13 = por %p844_p12, %p843_p1 }
 0x16e   : > { %p841_p8 = pneg %p840_p2 }
 0x16f   : > { %p847_p6 = por %p846_p11, %p845_p13 }
 0x171   : > { %p848_p3 = pnand %p847_p6, %p841_p8 }
 0x173   : > { %851 = shalt.err (!%p848_p3)
}
 0x174   : > { %s924_s25 = smov 128   ;;  %s925_s24 = smov 8  }
 0x175   : > { %624 = dma.vmem_to_hbm [thread:$0]  (%p1111_p10), %s1184_s27, 512, %s1189_s29, %s443_s18, %s924_s25, %s924_s25, %s925_s24  }
 0x176 PF: > { %s1262_s22 = sld [smem:[#allocation15_spill]]  ;;  %s472_s28 = sand.u32 1, %s894_s15  }
 0x177   : > { %p1264_p7 = scmp.ge.s32.totalorder %s914_s20, 2  ;;  %s473_s8 = scalar_lea.sflag [#allocation4], %s472_s28 }
 0x17c   : > { %p1263_p5 = scmp.ne.s32.totalorder %s1262_s22, 0 }
 0x17e   : > { %p641_p9 = pnand %p1264_p7, %p1263_p5 }
 0x180   : > { %889 = dma.done.wait (!%p641_p9), %s473_s8, 512  }
 0x181   : > { %891 = vsyncadd (!%p641_p9), %s473_s8, 4294966784  ;;  %s22_s20 = sadd.s32 1, %s914_s20   ;;  %s1265_s15 = smov %s898_s16 }
 0x182   : > { %p19_p0 = scmp.ge.s32.totalorder %s22_s20, 4   ;;  %s1266_s16 = smov %s902_s17 }
 0x183   : > { %s1267_s17 = smov %s1123_s7  ;;  %s1268_s18 = smov %s910_s19 }
 0x184   : > { %s1269_s19 = smov %s1271_s30  ;;  %21 = sbr.rel (!%p19_p0) target bundleno = 8 (0x8), region = 93 }
 0x18b   :  { %478 = vsyncpa [#allocation3], 1 }
 0x18c   :  { %480 = vsyncpa [#allocation3 + $0x1], 1 }
 0x18d   :  { %481 = vsyncpa [#allocation6], 1 }
 0x18e   :  { %482 = vsyncpa [#allocation9], 1 }
 0x18f   :  { %483 = vsyncpa [#allocation4], 1 }
 0x190   :  { %485 = vsyncpa [#allocation4 + $0x1], 1 }

</bundles_post_ra>
